<compile_context>
chip_gen: v6e
topology: v6e:2x2x1
jax: 0.10.0
libtpu: 0.0.40
codegen_flags: <defaults>
</compile_context>

<pallas_src>
import jax
import jax.numpy as jnp
from jax.experimental import pallas as pl
from jax.experimental.pallas import tpu as pltpu


def _round_up(x, m):
    return ((x + m - 1) // m) * m


# ---------------------------------------------------------------------------
# Stage 1: tmp = feat @ weight   (tiny, single block, computed once)
# ---------------------------------------------------------------------------
def _feat_weight_kernel(feat_ref, w_ref, tmp_ref):
    acc = jnp.dot(feat_ref[...], w_ref[...], preferred_element_type=jnp.float32)
    tmp_ref[...] = acc.astype(tmp_ref.dtype)


# ---------------------------------------------------------------------------
# Stage 2: out = adj @ tmp   (row-tiled, pipelined adj stream; tmp resident)
# ---------------------------------------------------------------------------
def _adj_matmul_kernel(adj_ref, tmp_ref, out_ref):
    acc = jnp.dot(adj_ref[...], tmp_ref[...], preferred_element_type=jnp.float32)
    out_ref[...] = acc.astype(out_ref.dtype)


def _vmem_footprint(tm, n_pad, out_pad, out_itemsize, c_itemsize=2):
    adj_bytes = 2 * tm * n_pad * c_itemsize         # double-buffered adj row tile
    tmp_bytes = 2 * n_pad * out_pad * c_itemsize    # resident tmp (conservative x2)
    out_bytes = 2 * tm * out_pad * out_itemsize     # double-buffered out tile
    return adj_bytes + tmp_bytes + out_bytes


def decoder_forward(feat, weight, adj, *, max_block_rows=512,
                    compute_dtype=jnp.bfloat16):
    """adj @ (feat @ weight), matching Decoder.forward."""
    N, in_feat = feat.shape
    assert weight.shape[0] == in_feat
    out_feat = weight.shape[1]
    assert adj.shape == (N, N)
    out_dtype = feat.dtype
    out_itemsize = jnp.dtype(out_dtype).itemsize

    # Lane-dense output: pad the output/weight column dim to a multiple of 128.
    out_pad = _round_up(out_feat, 128)

    # Pick the adj row tile: largest candidate that fits the VMEM budget.
    budget = 40 * 1024 * 1024
    cands = [c for c in (512, 256, 128, 64, 32, 16)
             if c <= max(max_block_rows, 16) and c <= _round_up(N, 16)]
    if not cands:
        cands = [16]
    tm = cands[-1]
    for c in cands:
        if _vmem_footprint(c, _round_up(N, c), out_pad, out_itemsize) <= budget:
            tm = c
            break
    n_pad = _round_up(N, tm)

    vmem_limit = int(max(
        _vmem_footprint(tm, n_pad, out_pad, out_itemsize) + 8 * 1024 * 1024,
        32 * 1024 * 1024))

    # Zero-pad (padded feat/adj rows are zero -> padded outputs are zero,
    # sliced off at the end) and cast to the bf16 MXU dtype.
    feat_c = jnp.pad(feat, ((0, n_pad - N), (0, 0))).astype(compute_dtype)
    w_c = jnp.pad(weight, ((0, 0), (0, out_pad - out_feat))).astype(compute_dtype)
    adj_c = jnp.pad(adj, ((0, n_pad - N), (0, n_pad - N))).astype(compute_dtype)

    # ---- Stage 1: tmp = feat @ weight (once) ----
    tmp = pl.pallas_call(
        _feat_weight_kernel,
        out_shape=jax.ShapeDtypeStruct((n_pad, out_pad), compute_dtype),
        grid_spec=pltpu.PrefetchScalarGridSpec(
            num_scalar_prefetch=0,
            grid=(1,),
            in_specs=[
                pl.BlockSpec((n_pad, in_feat), lambda i: (0, 0)),
                pl.BlockSpec((in_feat, out_pad), lambda i: (0, 0)),
            ],
            out_specs=pl.BlockSpec((n_pad, out_pad), lambda i: (0, 0)),
        ),
        compiler_params=pltpu.CompilerParams(
            dimension_semantics=("arbitrary",),
            vmem_limit_bytes=vmem_limit,
        ),
    )(feat_c, w_c)

    # ---- Stage 2: out = adj @ tmp, tiled over adj rows ----
    grid = (n_pad // tm,)
    out_padded = pl.pallas_call(
        _adj_matmul_kernel,
        out_shape=jax.ShapeDtypeStruct((n_pad, out_pad), out_dtype),
        grid_spec=pltpu.PrefetchScalarGridSpec(
            num_scalar_prefetch=0,
            grid=grid,
            in_specs=[
                pl.BlockSpec((tm, n_pad), lambda i: (i, 0)),     # streamed adj rows
                pl.BlockSpec((n_pad, out_pad), lambda i: (0, 0)),  # resident tmp
            ],
            out_specs=pl.BlockSpec((tm, out_pad), lambda i: (i, 0)),
        ),
        compiler_params=pltpu.CompilerParams(
            dimension_semantics=("parallel",),   # shard row tiles across TCs (v7x)
            vmem_limit_bytes=vmem_limit,
        ),
    )(adj_c, tmp)

    return out_padded[:N, :out_feat]


def xavier_uniform(key, in_feat, out_feat, dtype=jnp.float32):
    # Matches torch.nn.init.xavier_uniform_: U(-a, a), a = sqrt(6/(fan_in+fan_out))
    bound = (6.0 / (in_feat + out_feat)) ** 0.5
    return jax.random.uniform(
        key, (in_feat, out_feat), dtype=dtype, minval=-bound, maxval=bound
    )


if __name__ == "__main__":
    N = 64         # number of nodes / cells
    in_feat = 32   # latent dim
    out_feat = 16  # reconstructed feature dim

    key = jax.random.PRNGKey(0)
    k_feat, k_w, k_adj = jax.random.split(key, 3)

    feat = jax.random.normal(k_feat, (N, in_feat), dtype=jnp.float32)
    weight = xavier_uniform(k_w, in_feat, out_feat)
    # Dense, row-normalized adjacency (stand-in for torch.spmm's sparse adj).
    adj_raw = (jax.random.uniform(k_adj, (N, N)) < 0.1).astype(jnp.float32)
    adj_raw = adj_raw + jnp.eye(N, dtype=jnp.float32)  # self loops
    adj = adj_raw / jnp.sum(adj_raw, axis=1, keepdims=True)

    out = decoder_forward(feat, weight, adj)
    jax.block_until_ready(out)

    # Correctness check against plain-JAX f32 reference (loose tolerance: the
    # kernel uses bf16 operands with f32 accumulation).
    ref = adj @ (feat @ weight)
    assert out.shape == (N, out_feat)
    assert out.dtype == feat.dtype
    assert jnp.allclose(out, ref, atol=5e-2, rtol=5e-2), (
        float(jnp.max(jnp.abs(out - ref))))

    print("KERNEL_OK")
</pallas_src>

<mosaic_0001>
module attributes {stable_mosaic.version = 11 : i64} {
  func.func @_feat_weight_kernel(%arg0: i32, %arg1: memref<64x32xbf16, #tpu.memory_space<vmem>>, %arg2: memref<32x128xbf16, #tpu.memory_space<vmem>>, %arg3: memref<64x128xbf16, #tpu.memory_space<vmem>>) attributes {dimension_semantics = [#tpu.dimension_semantics<arbitrary>], iteration_bounds = array<i64: 1>, scalar_prefetch = 0 : i64, scratch_operands = 0 : i64, tpu.core_type = #tpu.core_type<tc>, window_params = [{pipeline_mode = #tpu.pipeline_mode<synchronous>, transform_indices = @transform_0, window_bounds = array<i64: 64, 32>}, {pipeline_mode = #tpu.pipeline_mode<synchronous>, transform_indices = @transform_1, window_bounds = array<i64: 32, 128>}, {pipeline_mode = #tpu.pipeline_mode<synchronous>, transform_indices = @transform_2, window_bounds = array<i64: 64, 128>}]} {
    %c0 = arith.constant 0 : index
    %c0_0 = arith.constant 0 : index
    %0 = vector.load %arg1[%c0, %c0_0] : memref<64x32xbf16, #tpu.memory_space<vmem>>, vector<64x32xbf16>
    %c0_1 = arith.constant 0 : index
    %c0_2 = arith.constant 0 : index
    %1 = vector.load %arg2[%c0_1, %c0_2] : memref<32x128xbf16, #tpu.memory_space<vmem>>, vector<32x128xbf16>
    %cst = arith.constant dense<0.000000e+00> : vector<64x128xf32>
    %2 = tpu.matmul %0, %1, %cst {dimension_numbers = #tpu.dot_dimension_numbers<[1], [0], [0], [1], [0, 0, 1, 1], [], []>} : vector<64x32xbf16>, vector<32x128xbf16>, vector<64x128xf32> -> vector<64x128xf32>
    %3 = arith.truncf %2 : vector<64x128xf32> to vector<64x128xbf16>
    %c0_3 = arith.constant 0 : index
    %c0_4 = arith.constant 0 : index
    %4 = vector.load %arg3[%c0_3, %c0_4] : memref<64x128xbf16, #tpu.memory_space<vmem>>, vector<64x128xbf16>
    tpu.vector_store %arg3[%c0_3, %c0_4], %3 {strides = array<i32>} : memref<64x128xbf16, #tpu.memory_space<vmem>>, vector<64x128xbf16>,
    return
  }
  func.func @transform_0(%arg0: i32) -> (i32, i32) {
    %c0_i32 = arith.constant 0 : i32
    %c0_i32_0 = arith.constant 0 : i32
    %c0_i32_1 = arith.constant 0 : i32
    return %c0_i32, %c0_i32_0 : i32, i32
  }
  func.func @transform_1(%arg0: i32) -> (i32, i32) {
    %c0_i32 = arith.constant 0 : i32
    %c0_i32_0 = arith.constant 0 : i32
    %c0_i32_1 = arith.constant 0 : i32
    return %c0_i32, %c0_i32_0 : i32, i32
  }
  func.func @transform_2(%arg0: i32) -> (i32, i32) {
    %c0_i32 = arith.constant 0 : i32
    %c0_i32_0 = arith.constant 0 : i32
    %c0_i32_1 = arith.constant 0 : i32
    return %c0_i32, %c0_i32_0 : i32, i32
  }
}

</mosaic_0001>

<bundles_post_ra>
// kernel: tpu_custom_call.1
= control target key start
LH: loop header
LB: loop body
LE: loop exit
PB: predicated region body
PF: predicated region fallthrough
CT: control target
= control target key end

     0   :  { %vm57_vm0 = vcmask 261120   ;;  %s332_s0 = inlined_call_operand.vmem [shape: bf16[64,32], index: 0, kind: input, shape index: {}]   ;;  %s333_s1 = inlined_call_operand.vmem [shape: bf16[32,128], index: 1, kind: input, shape index: {}]   ;;  %s334_s2 = inlined_call_operand.hbm [shape: bf16[64,128], index: 2, kind: output, shape index: {}]  }
   0x1   :  { %v265_v0 = vld [vmem:[%s333_s1 + $0x8] sm:$0xff]   ;;  %v266_v1 = vld [vmem:[%s333_s1] sm:$0xff]   ;;  %v268_v3 = vld [vmem:[%s332_s0 + $0x10] sm:$0xff]  }
   0x2   :  { %246 = vmatprep.subr.bf16.mxu0 %v265_v0  ;;  %258 = vmatprep.subr.bf16.mxu1 %v265_v0  ;;  %v267_v2 = vld [vmem:[%s332_s0] sm:$0xff]   ;;  %v269_v4 = vld [vmem:[%s332_s0 + $0x8] sm:$0xff]   ;;  %v270_v5 = vld [vmem:[%s332_s0 + $0x18] sm:$0xff]  }
   0x3   :  { %247 = vmatpush3.bf16.msra.mxu0 %v265_v0  ;;  %260 = vmatpush3.bf16.msra.mxu1 %v265_v0 }
   0x4   :  { %248 = vmatprep.subr.bf16.mxu0 %v266_v1  ;;  %259 = vmatprep.subr.bf16.mxu1 %v266_v1 }
   0x5   :  { %250 = vmatprep.mubr.msk.bf16.mxu0 %vm57_vm0, %v267_v2  ;;  %254 = vmatprep.mubr.msk.bf16.mxu1 %vm57_vm0, %v268_v3 }
   0x6   :  { %7 = vsyncpa [#allocation3], 0  ;;  %s293_s20 = smov [#allocation2]  }
   0x7   :  { %249 = vmatpush3.bf16.msra.mxu0 %v266_v1  ;;  %261 = vmatpush3.bf16.msra.mxu1 %v266_v1  ;;  %s180_s21 = sshll.u32 %s293_s20, 4  ;;  %s181_s21 = int_to_ptr.vmem [resolvable:$true] %s180_s21 }
   0x8   :  { %s271_s0 = scalar_lea.vmem %s181_s21, 512  ;;  %p276_p1 = scmp.lt.s32.totalorder %s181_s21, %s181_s21 }
   0x9   :  { %p272_p0 = scmp.ne.s32.totalorder %s181_s21, %s271_s0  ;;  %p277_p2 = scmp.lt.s32.totalorder %s271_s0, %s271_s0 }
   0xa   :  { %251 = vmatmul.mubr.msk.bf16.vlgmr.msra.gmra.mxu0 %vm57_vm0, %v269_v4  ;;  %255 = vmatmul.mubr.msk.bf16.vlgmr.msra.gmra.mxu1 %vm57_vm0, %v270_v5 }
   0xb   :  { %p278_p3 = por %p277_p2, %p276_p1 }
   0xd   :  { %p279_p4 = pnand %p278_p3, %p272_p0 }
  0xca   :  { %v252_v6 = vpop.f32.mrf.mxu0  ;;  %v256_v7 = vpop.f32.mrf.mxu1 }
  0xcc   :  { %v104_v8 = vpop.f32.mrf.mxu0  ;;  %v120_v9 = vpop.f32.mrf.mxu1 }
  0xce   :  { %v253_v10 = vpop.f32.mrf.mxu0  ;;  %v257_v11 = vpop.f32.mrf.mxu1 }
  0xcf   :  { %v225_v12 = vpack.c.bf16 %v253_v10, %v252_v6  ;;  %v235_v13 = vpack.c.bf16 %v257_v11, %v256_v7 }
  0xd0   :  { %v107_v14 = vpop.f32.mrf.mxu0  ;;  %v123_v15 = vpop.f32.mrf.mxu1 }
  0xd1   :  { %237 = vst [vmem:[#allocation2 + $0x8] sm:$0xff] %v225_v12   ;;  %239 = vst [vmem:[#allocation2 + $0x18] sm:$0xff] %v235_v13   ;;  %v220_v16 = vpack.c.bf16 %v107_v14, %v104_v8  ;;  %v230_v17 = vpack.c.bf16 %v123_v15, %v120_v9 }
  0xd3   :  { %221 = vst [vmem:[#allocation2] sm:$0xff] %v220_v16   ;;  %238 = vst [vmem:[#allocation2 + $0x10] sm:$0xff] %v230_v17  }
  0xd4   :  { %282 = shalt.err (!%p279_p4)
}
  0xd5   :  { %s294_s22 = smov 64   ;;  %s295_s23 = smov 4  }
  0xd6   :  { %186 = dma.vmem_to_hbm [thread:$0]  %s181_s21, 512, %s334_s2, [#allocation3], %s294_s22, %s294_s22, %s295_s23  }
  0xd7   :  { %291 = dma.done.wait [#allocation3], 512  }
  0xd8   :  { %292 = vsyncadd [#allocation3], 4294966784 }
  0xd9   :  { %190 = vsyncpa [#allocation3], 1 }

</bundles_post_ra>
